<compile_context>
chip_gen: v5e
topology: v5e:2x2
jax: 0.10.0
libtpu: 0.0.40
codegen_flags: <defaults>
</compile_context>

<pallas_src>
import jax
import jax.numpy as jnp
from jax.experimental import pallas as pl
from jax.experimental.pallas import tpu as pltpu


def _gcn2_kron_kernel(x_ref, k_ref, b_ref, o_ref):
    """out = tanh(X_flat @ K + B): one MXU matmul + VPU add + EUP tanh.

    X_flat: (S, N*F)   per-slice row-major flattened input
    K:      (N*F, N*F) kron(A2^T, W12a) — both GCN layers + graph propagation
    B:      (S, N*F)   per-slice bias (conv biases + mask-channel term folded in)
    """
    y = jnp.dot(x_ref[...], k_ref[...], preferred_element_type=jnp.float32)
    o_ref[...] = jnp.tanh(y + b_ref[...])


@jax.jit
def fine_tune_forward(x, mask, a_hat, w1, b1, w2, b2):
    """x: [B,H,N,F] f32, mask: [B,H], a_hat: [N,N] f32,
    w1: [F+1,Hd], b1: [Hd], w2: [Hd,F], b2: [F]  ->  [B,H,N,F]."""
    B, H, N, F = x.shape
    S = B * H

    f32 = jnp.float32
    a_hat = a_hat.astype(f32)
    w1 = w1.astype(f32)
    w2 = w2.astype(f32)

    # ---- exact algebraic folds (tiny, done once in the wrapper) -------------
    w12 = w1 @ w2                       # (F+1, F)  — both weight matrices fused
    w12a = w12[:F, :]                   # (F, F)    — acts on the real features
    w12m = w12[F, :]                    # (F,)      — acts on the mask column
    a2 = a_hat @ a_hat                  # (N, N)    — both propagations fused
    row_a = a_hat.sum(axis=1)           # A  @ 1
    row_a2 = a2.sum(axis=1)             # A2 @ 1

    # conv1 bias folded through conv2, plus conv2 bias:  (N, F)
    b_eff = row_a[:, None] * (b1.astype(f32) @ w2)[None, :] + b2.astype(f32)[None, :]
    # mask channel folded into a per-slice rank-1 bias:  (N, F)
    mask_bias = row_a2[:, None] * w12m[None, :]

    m = mask.reshape(S).astype(f32)                                   # (S,)
    bias_full = (b_eff.reshape(1, N * F)
                 + m[:, None] * mask_bias.reshape(1, N * F))          # (S, N*F)

    # Kronecker collapse:  vec_r(A2 @ X @ W12a) = vec_r(X) @ kron(A2^T, W12a)
    K = jnp.kron(a2.T, w12a)                                          # (N*F, N*F)

    x_flat = x.reshape(S, N * F).astype(f32)                          # free reshape

    # ---- one fused kernel: single grid step, 3 inputs, lane-dense output ----
    out = pl.pallas_call(
        _gcn2_kron_kernel,
        out_shape=jax.ShapeDtypeStruct((S, N * F), f32),
        grid=(1,),
        in_specs=[
            pl.BlockSpec((S, N * F), lambda i: (0, 0)),        # x (flattened)
            pl.BlockSpec((N * F, N * F), lambda i: (0, 0)),    # fused operator K
            pl.BlockSpec((S, N * F), lambda i: (0, 0)),        # per-slice bias
        ],
        out_specs=pl.BlockSpec((S, N * F), lambda i: (0, 0)),
        compiler_params=pltpu.CompilerParams(
            dimension_semantics=("arbitrary",)),
    )(x_flat, K, bias_full)

    return out.reshape(B, H, N, F).astype(x.dtype)


def build_norm_adj(edge_index, num_nodes):
    """Dense D^{-1/2} (A + I) D^{-1/2} from a [2, E] int edge_index (glue)."""
    src = edge_index[0]
    dst = edge_index[1]
    A = jnp.zeros((num_nodes, num_nodes), jnp.float32)
    A = A.at[dst, src].add(1.0)          # message flows src -> dst
    A = A + jnp.eye(num_nodes, dtype=jnp.float32)
    deg = A.sum(axis=1)
    d_inv_sqrt = jnp.where(deg > 0, jax.lax.rsqrt(deg), 0.0)
    return d_inv_sqrt[:, None] * A * d_inv_sqrt[None, :]


def reference(x, mask, a_hat, w1, b1, w2, b2):
    """Pure-JAX reference matching the PyTorch forward semantics (per-hour loop)."""
    B, H, N, F = x.shape
    hp = jax.lax.Precision.HIGHEST
    outs = []
    for h in range(H):
        mch = jnp.broadcast_to(mask[:, h][:, None, None], (B, N, 1)).astype(x.dtype)
        masked_input = jnp.concatenate([x[:, h], mch], axis=-1)          # (B,N,F+1)
        xw = jnp.einsum('bnc,ch->bnh', masked_input, w1, precision=hp)
        enc = jnp.einsum('ij,bjk->bik', a_hat, xw, precision=hp) + b1
        ew = jnp.einsum('bnh,hf->bnf', enc, w2, precision=hp)
        dec = jnp.einsum('ij,bjk->bik', a_hat, ew, precision=hp) + b2
        outs.append(jnp.tanh(dec))
    return jnp.stack(outs, axis=1)


if __name__ == "__main__":
    B, H, N, F, HID = 2, 8, 16, 4, 32   # batch, hours, nodes, features, hidden

    key = jax.random.PRNGKey(0)
    k = jax.random.split(key, 6)

    x = jax.random.normal(k[0], (B, H, N, F), jnp.float32)
    mask = (jax.random.uniform(k[1], (B, H)) > 0.5).astype(jnp.float32)

    # Deterministic ring graph (both directions), shared across the batch.
    idx = jnp.arange(N, dtype=jnp.int32)
    src = jnp.concatenate([idx, (idx + 1) % N])
    dst = jnp.concatenate([(idx + 1) % N, idx])
    edge_index = jnp.stack([src, dst]).astype(jnp.int32)   # [2, 2N]

    # Deterministic parameter init (GCNConv: weight [in, out], bias [out]).
    w1 = jax.random.normal(k[2], (F + 1, HID), jnp.float32) / jnp.sqrt(F + 1.0)
    b1 = 0.01 * jax.random.normal(k[3], (HID,), jnp.float32)
    w2 = jax.random.normal(k[4], (HID, F), jnp.float32) / jnp.sqrt(float(HID))
    b2 = 0.01 * jax.random.normal(k[5], (F,), jnp.float32)

    a_hat = build_norm_adj(edge_index, N)

    out = fine_tune_forward(x, mask, a_hat, w1, b1, w2, b2)
    jax.block_until_ready(out)

    ref = reference(x, mask, a_hat, w1, b1, w2, b2)
    assert out.shape == (B, H, N, F)
    # The algebraic folds (W1@W2, A@A, bias/mask folds, Kronecker collapse) are
    # exact in infinite precision but change the f32 rounding order vs. the
    # reference association, so allow a slightly looser absolute tolerance.
    assert jnp.allclose(out, ref, atol=1e-4, rtol=1e-5), "mismatch vs reference"

    print("KERNEL_OK")
</pallas_src>

<mosaic_0001>
module attributes {stable_mosaic.version = 11 : i64} {
  func.func @_gcn2_kron_kernel(%arg0: i32, %arg1: memref<16x64xf32, #tpu.memory_space<vmem>>, %arg2: memref<64x64xf32, #tpu.memory_space<vmem>>, %arg3: memref<16x64xf32, #tpu.memory_space<vmem>>, %arg4: memref<16x64xf32, #tpu.memory_space<vmem>>) attributes {dimension_semantics = [#tpu.dimension_semantics<arbitrary>], iteration_bounds = array<i64: 1>, scalar_prefetch = 0 : i64, scratch_operands = 0 : i64, tpu.core_type = #tpu.core_type<tc>, window_params = [{pipeline_mode = #tpu.pipeline_mode<synchronous>, transform_indices = @transform_0, window_bounds = array<i64: 16, 64>}, {pipeline_mode = #tpu.pipeline_mode<synchronous>, transform_indices = @transform_1, window_bounds = array<i64: 64, 64>}, {pipeline_mode = #tpu.pipeline_mode<synchronous>, transform_indices = @transform_2, window_bounds = array<i64: 16, 64>}, {pipeline_mode = #tpu.pipeline_mode<synchronous>, transform_indices = @transform_3, window_bounds = array<i64: 16, 64>}]} {
    %c0 = arith.constant 0 : index
    %c0_0 = arith.constant 0 : index
    %0 = vector.load %arg1[%c0, %c0_0] : memref<16x64xf32, #tpu.memory_space<vmem>>, vector<16x64xf32>
    %c0_1 = arith.constant 0 : index
    %c0_2 = arith.constant 0 : index
    %1 = vector.load %arg2[%c0_1, %c0_2] : memref<64x64xf32, #tpu.memory_space<vmem>>, vector<64x64xf32>
    %cst = arith.constant dense<0.000000e+00> : vector<16x64xf32>
    %2 = tpu.matmul %0, %1, %cst {dimension_numbers = #tpu.dot_dimension_numbers<[1], [0], [0], [1], [0, 0, 1, 1], [], []>} : vector<16x64xf32>, vector<64x64xf32>, vector<16x64xf32> -> vector<16x64xf32>
    %c0_3 = arith.constant 0 : index
    %c0_4 = arith.constant 0 : index
    %3 = vector.load %arg3[%c0_3, %c0_4] : memref<16x64xf32, #tpu.memory_space<vmem>>, vector<16x64xf32>
    %4 = arith.addf %2, %3 : vector<16x64xf32>
    %5 = math.tanh %4 : vector<16x64xf32>
    %c0_5 = arith.constant 0 : index
    %c0_6 = arith.constant 0 : index
    %6 = vector.load %arg4[%c0_5, %c0_6] : memref<16x64xf32, #tpu.memory_space<vmem>>, vector<16x64xf32>
    tpu.vector_store %arg4[%c0_5, %c0_6], %5 {strides = array<i32>} : memref<16x64xf32, #tpu.memory_space<vmem>>, vector<16x64xf32>,
    return
  }
  func.func @transform_0(%arg0: i32) -> (i32, i32) {
    %c0_i32 = arith.constant 0 : i32
    %c0_i32_0 = arith.constant 0 : i32
    %c0_i32_1 = arith.constant 0 : i32
    return %c0_i32, %c0_i32_0 : i32, i32
  }
  func.func @transform_1(%arg0: i32) -> (i32, i32) {
    %c0_i32 = arith.constant 0 : i32
    %c0_i32_0 = arith.constant 0 : i32
    %c0_i32_1 = arith.constant 0 : i32
    return %c0_i32, %c0_i32_0 : i32, i32
  }
  func.func @transform_2(%arg0: i32) -> (i32, i32) {
    %c0_i32 = arith.constant 0 : i32
    %c0_i32_0 = arith.constant 0 : i32
    %c0_i32_1 = arith.constant 0 : i32
    return %c0_i32, %c0_i32_0 : i32, i32
  }
  func.func @transform_3(%arg0: i32) -> (i32, i32) {
    %c0_i32 = arith.constant 0 : i32
    %c0_i32_0 = arith.constant 0 : i32
    %c0_i32_1 = arith.constant 0 : i32
    return %c0_i32, %c0_i32_0 : i32, i32
  }
}

</mosaic_0001>

<bundles_post_ra>
// kernel: mul.50
= control target key start
LH: loop header
LB: loop body
LE: loop exit
PB: predicated region body
PF: predicated region fallthrough
CT: control target
= control target key end

     0   :  { %vm7_vm0 = vcmask 64512   ;;  %vm13_vm1 = vcmask 130112   ;;  %s39_s0 = inlined_call_operand.vmem [shape: f32[2,8], index: 0, kind: input, shape index: {}]   ;;  %s40_s1 = inlined_call_operand.vmem [shape: f32[16], index: 1, kind: output, shape index: {}]  }
   0x1   :  { %v4_v0 = vld [vmem:[%s39_s0] sm:$0x3]  ;;  %s22_s0 = smov 8  }
   0x2   :  { %5 = vst [vmem:[#allocation1] sm:$0x3] %v4_v0 }
   0x9   :  { %v10_v1 = vld [vmem:[#allocation1 + $0x1] sm:$0x1]   ;;  %v6_v2 = vld [vmem:[#allocation1] sm:$0x1]  }
   0xa   :  { %11 = vrot.lane.b32.xlu0 %v10_v1, %s22_s0  ;;  %8 = vst.msk [vmem:[#allocation0] sm:$0x1] %vm7_vm0, %v6_v2  }
  0x7c   :  { %v12_v3 = vpop.permute.xlu0 %11  }
  0x7d   :  { %14 = vst.msk [vmem:[#allocation0] sm:$0x1] %vm13_vm1, %v12_v3  }
  0x84   :  { %v17_v4 = vld [vmem:[#allocation0] sm:$0x1] }
  0x85   :  { %20 = vst [vmem:[%s40_s1] sm:$0x1] %v17_v4 }

// kernel: fine_tune_forward.1
= control target key start
LH: loop header
LB: loop body
LE: loop exit
PB: predicated region body
PF: predicated region fallthrough
CT: control target
= control target key end

     0   :  { %vm26_vm0 = vcmask 523264   ;;  %s144_s1 = inlined_call_operand.vmem [shape: f32[64,64], index: 1, kind: input, shape index: {}]   ;;  %s145_s0 = inlined_call_operand.vmem [shape: f32[16,64], index: 0, kind: input, shape index: {}]   ;;  %s146_s2 = inlined_call_operand.vmem [shape: f32[16,64], index: 2, kind: input, shape index: {}]   ;;  %s147_s3 = inlined_call_operand.vmem [shape: f32[16,64], index: 3, kind: output, shape index: {}]  }
   0x1   :  { %v23_v0 = vld [vmem:[%s144_s1 + $0x38] sm:$0xff]  ;;  %v22_v1 = vld [vmem:[%s144_s1 + $0x30] sm:$0xff]  ;;  %v21_v2 = vld [vmem:[%s144_s1 + $0x28] sm:$0xff] }
   0x2   :  { %41 = vmatpush.msra.mxu0 %v23_v0  ;;  %66 = vmatpush.msra.mxu1 %v23_v0  ;;  %v20_v3 = vld [vmem:[%s144_s1 + $0x20] sm:$0xff]  ;;  %v19_v4 = vld [vmem:[%s144_s1 + $0x18] sm:$0xff]  ;;  %v18_v5 = vld [vmem:[%s144_s1 + $0x10] sm:$0xff] }
   0x3   :  { %v17_v6 = vld [vmem:[%s144_s1 + $0x8] sm:$0xff]  ;;  %v16_v7 = vld [vmem:[%s144_s1] sm:$0xff] }
   0x4   :  { %42 = vmatpush.msra.mxu0 %v22_v1  ;;  %67 = vmatpush.msra.mxu1 %v22_v1  ;;  %v14_v8 = vld [vmem:[%s145_s0] sm:$0xff]  ;;  %v15_v9 = vld [vmem:[%s145_s0 + $0x8] sm:$0xff] }
   0x5   :  { %v24_v10 = vld [vmem:[%s146_s2] sm:$0xff]  ;;  %v25_v11 = vld [vmem:[%s146_s2 + $0x8] sm:$0xff] }
   0x6   :  { %43 = vmatpush.msra.mxu0 %v21_v2  ;;  %68 = vmatpush.msra.mxu1 %v21_v2 }
   0x8   :  { %44 = vmatpush.msra.mxu0 %v20_v3  ;;  %69 = vmatpush.msra.mxu1 %v20_v3 }
   0xa   :  { %45 = vmatpush.msra.mxu0 %v19_v4  ;;  %70 = vmatpush.msra.mxu1 %v19_v4 }
   0xc   :  { %46 = vmatpush.msra.mxu0 %v18_v5  ;;  %71 = vmatpush.msra.mxu1 %v18_v5 }
   0xe   :  { %47 = vmatpush.msra.mxu0 %v17_v6  ;;  %72 = vmatpush.msra.mxu1 %v17_v6 }
  0x10   :  { %48 = vmatpush.msra.mxu0 %v16_v7  ;;  %73 = vmatpush.msra.mxu1 %v16_v7 }
  0x11   :  { %64 = vmatmul.msk.f32.vlgmr.msra.gmra.mxu0 %vm26_vm0, %v14_v8  ;;  %65 = vmatmul.msk.f32.vlgmr.msra.gmra.mxu1 %vm26_vm0, %v15_v9 }
  0x8e   :  { %v50_v12 = vpop.f32.mrf.mxu0  ;;  %v53_v13 = vpop.f32.mrf.mxu1 }
  0x8f   :  { %v51_v14 = vadd.f32 %v50_v12, %v24_v10  ;;  %v54_v15 = vadd.f32 %v53_v13, %v25_v11 }
  0x91   :  { %74 = vtanh.f32 %v51_v14 }
  0x92   :  { %76 = vtanh.f32 %v54_v15 }
  0x97   :  { %v75_v16 = vpop.eup %74 }
  0x98   :  { %v77_v17 = vpop.eup %76  ;;  %58 = vst.msk [vmem:[%s147_s3] sm:$0xff] %vm26_vm0, %v75_v16 }
  0x99   :  { %59 = vst.msk [vmem:[%s147_s3 + $0x8] sm:$0xff] %vm26_vm0, %v77_v17 }

</bundles_post_ra>
